<compile_context>
chip_gen: v5e
topology: v5e:2x2
jax: 0.10.0
libtpu: 0.0.40
codegen_flags: <defaults>
</compile_context>

<pallas_src>
import functools

import jax
import jax.numpy as jnp
from jax import lax
from jax.experimental import pallas as pl
from jax.experimental.pallas import tpu as pltpu


def _round_up(x, m):
    return (x + m - 1) // m * m


def _tpu_traits():
    """(activation dtype for the erf section, #TensorCores sharing the grid)."""
    act = jnp.bfloat16
    cores = 1
    try:
        kind = jax.devices()[0].device_kind.lower()
    except Exception:
        return jnp.float32, 1
    if any(v in kind for v in ("v2", "v3", "v4", "v5")):
        act = jnp.float32          # no bf16 VPU/EUP path on <= v5e
    if "v7" in kind:
        cores = 2                  # v7x: 2 TCs per chip share parallel grid axes
    return act, cores


def williams_kernel(x_ref, w1_ref, b1_ref, w2_ref, b2_ref, o_ref, *, act_dtype):
    # x_ref : (TB, D) f32   native PyTorch layout, streamed per grid step
    # w1_ref: (H, D)  f32   fc1.weight (resident; constant index_map)
    # b1_ref: (H, 1)  f32
    # w2_ref: (H, 1)  f32   fc2.weight as a column
    # b2_ref: (1,)    f32   fc2.bias scalar in SMEM
    # o_ref : (1, TB) f32   lane-dense output tile (batch on lanes)
    x_bf = x_ref[...].astype(jnp.bfloat16)     # in-kernel cast (VPU slack)
    w1_bf = w1_ref[...].astype(jnp.bfloat16)   # tiny resident weight, cast per step
    # fc1 on the MXU, contracting over D => (H, TB) with batch on lanes.
    h = lax.dot_general(
        w1_bf, x_bf,
        dimension_numbers=(((1,), (1,)), ((), ())),
        preferred_element_type=jnp.float32)                       # (H, TB) f32
    # bias + erf: bf16 on v6e/v7x (VALU-bound section), f32 on v5e.
    a = h.astype(act_dtype) + b1_ref[...].astype(act_dtype)
    g = lax.erf(a).astype(jnp.float32)
    # fc2 (N=1): VPU multiply + XLU sublane reduce; fold the scalar bias here.
    o_ref[...] = jnp.sum(g * w2_ref[...], axis=0, keepdims=True) + b2_ref[0]


@functools.partial(jax.jit, static_argnames=("block_b",))
def williams_nn_forward(x, w1, b1, w2, b2, *, block_b=16384):
    """WilliamsNN forward.

    x : (B, D) f32
    w1: (H, D) f32   (PyTorch fc1.weight layout)
    b1: (H,)   f32
    w2: (H,)   f32   (PyTorch fc2.weight flattened)
    b2: ()     f32
    returns (B, 1) f32
    """
    B, D = x.shape
    H = w1.shape[0]

    act_dtype, num_tc = _tpu_traits()

    # ---- Batch tile selection ------------------------------------------------
    # Aim for >= num_tc grid steps (v7x megacore) and <= block_b rows per step;
    # balance tiles so the padded tail never wastes ~a full tile of erf work.
    n_tiles = max(num_tc, pl.cdiv(B, block_b))
    tb = _round_up(pl.cdiv(B, n_tiles), 128)

    # VMEM budget per step (keep under the 32 MiB scoped default; v7x has only
    # 64 MiB physical per TC).  Note the (TB, D) f32 x tile lane-pads D up to
    # 128, plus the (H, TB) pre-activation / activation / product temporaries
    # and the double-buffered (8-sublane-padded, TB) output.
    act_bytes = jnp.dtype(act_dtype).itemsize
    per_row = (2 * _round_up(D, 128) * 4
               + _round_up(H, 8) * (4 + act_bytes + 4)
               + 2 * 8 * 4)
    tb_cap = max(128, ((24 * 1024 * 1024) // per_row) // 128 * 128)
    tb = min(tb, tb_cap)

    if tb >= B:
        # Single full-array block: every BlockSpec dim equals the array dim,
        # so no padding / partial blocks at all.
        tb = B
        n_tiles = 1
    else:
        n_tiles = pl.cdiv(B, tb)   # last block may be partial: OOB reads only
                                   # feed columns that are never written back.
    grid = (n_tiles,)
    rows_computed = n_tiles * tb

    b1_col = b1.reshape(H, 1).astype(jnp.float32)
    w2_col = w2.reshape(H, 1).astype(jnp.float32)
    b2_s = jnp.reshape(b2, (1,)).astype(jnp.float32)

    cost = pl.CostEstimate(
        flops=2 * rows_computed * H * D + 3 * rows_computed * H,
        transcendentals=rows_computed * H,
        bytes_accessed=(x.size * 4 + w1.size * 4
                        + (b1_col.size + w2_col.size + 1) * 4 + B * 4),
    )

    out = pl.pallas_call(
        functools.partial(williams_kernel, act_dtype=act_dtype),
        out_shape=jax.ShapeDtypeStruct((1, B), jnp.float32),
        grid=grid,
        in_specs=[
            pl.BlockSpec((tb, D), lambda i: (i, 0)),              # streamed x tile
            pl.BlockSpec((H, D), lambda i: (0, 0)),               # resident fc1.weight
            pl.BlockSpec((H, 1), lambda i: (0, 0)),               # fc1.bias column
            pl.BlockSpec((H, 1), lambda i: (0, 0)),               # fc2.weight column
            pl.BlockSpec(memory_space=pltpu.MemorySpace.SMEM),    # fc2.bias scalar
        ],
        out_specs=pl.BlockSpec((1, tb), lambda i: (0, i)),        # lane-dense output
        compiler_params=pltpu.CompilerParams(
            dimension_semantics=("parallel",)),
        cost_estimate=cost,
    )(x.astype(jnp.float32), w1.astype(jnp.float32), b1_col, w2_col, b2_s)

    # (1, B) -> (B, 1) is a pure row-major reshape (no data movement); b2 is
    # already folded in-kernel, so no post-kernel arithmetic dispatch.
    return out.reshape(B, 1)


def init_params(key, input_size, h_size):
    """torch.nn.Linear-style uniform init (bound = 1/sqrt(fan_in)), PyTorch layouts."""
    k1, k2, k3, k4 = jax.random.split(key, 4)
    bound1 = 1.0 / jnp.sqrt(jnp.float32(input_size))
    bound2 = 1.0 / jnp.sqrt(jnp.float32(h_size))
    w1 = jax.random.uniform(k1, (h_size, input_size), jnp.float32, -bound1, bound1)
    b1 = jax.random.uniform(k2, (h_size,), jnp.float32, -bound1, bound1)
    w2 = jax.random.uniform(k3, (h_size,), jnp.float32, -bound2, bound2)
    b2 = jax.random.uniform(k4, (), jnp.float32, -bound2, bound2)
    return w1, b1, w2, b2


if __name__ == "__main__":
    key = jax.random.PRNGKey(0)
    k_x, k_p = jax.random.split(key)

    batch, input_size, h_size = 8, 16, 32
    x = jax.random.normal(k_x, (batch, input_size), jnp.float32)
    w1, b1, w2, b2 = init_params(k_p, input_size, h_size)

    out = williams_nn_forward(x, w1, b1, w2, b2)
    out = jax.block_until_ready(out)

    # Pure-JAX f32 reference; bf16 matmul operands (and bf16 erf on v6e/v7x)
    # => modest tolerance.
    ref = jax.lax.erf(x @ w1.T + b1) @ w2.reshape(-1, 1) + b2
    assert out.shape == (batch, 1)
    assert jnp.allclose(out, ref, atol=3e-2, rtol=3e-2), float(jnp.max(jnp.abs(out - ref)))

    print("KERNEL_OK")
</pallas_src>

<mosaic_0001>
module attributes {stable_mosaic.version = 11 : i64} {
  func.func @williams_kernel(%arg0: i32, %arg1: memref<8x16xf32, #tpu.memory_space<vmem>>, %arg2: memref<32x16xf32, #tpu.memory_space<vmem>>, %arg3: memref<32x1xf32, #tpu.memory_space<vmem>>, %arg4: memref<32x1xf32, #tpu.memory_space<vmem>>, %arg5: memref<1xf32, #tpu.memory_space<smem>>, %arg6: memref<1x8xf32, #tpu.memory_space<vmem>>) attributes {dimension_semantics = [#tpu.dimension_semantics<parallel>], iteration_bounds = array<i64: 1>, scalar_prefetch = 0 : i64, scratch_operands = 0 : i64, tpu.core_type = #tpu.core_type<tc>, window_params = [{transform_indices = @transform_0, window_bounds = array<i64: 8, 16>}, {pipeline_mode = #tpu.pipeline_mode<synchronous>, transform_indices = @transform_1, window_bounds = array<i64: 32, 16>}, {pipeline_mode = #tpu.pipeline_mode<synchronous>, transform_indices = @transform_2, window_bounds = array<i64: 32, 1>}, {pipeline_mode = #tpu.pipeline_mode<synchronous>, transform_indices = @transform_3, window_bounds = array<i64: 32, 1>}, {transform_indices = @transform_4, window_bounds = array<i64: 1>}, {transform_indices = @transform_5, window_bounds = array<i64: 1, 8>}]} {
    %c0 = arith.constant 0 : index
    %c0_0 = arith.constant 0 : index
    %0 = vector.load %arg1[%c0, %c0_0] : memref<8x16xf32, #tpu.memory_space<vmem>>, vector<8x16xf32>
    %1 = arith.truncf %0 : vector<8x16xf32> to vector<8x16xbf16>
    %c0_1 = arith.constant 0 : index
    %c0_2 = arith.constant 0 : index
    %2 = vector.load %arg2[%c0_1, %c0_2] : memref<32x16xf32, #tpu.memory_space<vmem>>, vector<32x16xf32>
    %3 = arith.truncf %2 : vector<32x16xf32> to vector<32x16xbf16>
    %cst = arith.constant dense<0.000000e+00> : vector<32x8xf32>
    %4 = tpu.matmul %3, %1, %cst {dimension_numbers = #tpu.dot_dimension_numbers<[1], [1], [0], [0], [0, 0, 1, 0], [], []>} : vector<32x16xbf16>, vector<8x16xbf16>, vector<32x8xf32> -> vector<32x8xf32>
    %5 = arith.truncf %4 : vector<32x8xf32> to vector<32x8xbf16>
    %c0_3 = arith.constant 0 : index
    %c0_4 = arith.constant 0 : index
    %6 = vector.load %arg3[%c0_3, %c0_4] : memref<32x1xf32, #tpu.memory_space<vmem>>, vector<32x1xf32>
    %7 = arith.truncf %6 : vector<32x1xf32> to vector<32x1xbf16>
    %8 = vector.broadcast %7 : vector<32x1xbf16> to vector<32x8xbf16>
    %9 = arith.addf %5, %8 : vector<32x8xbf16>
    %10 = math.erf %9 : vector<32x8xbf16>
    %11 = arith.extf %10 : vector<32x8xbf16> to vector<32x8xf32>
    %c0_5 = arith.constant 0 : index
    %c0_6 = arith.constant 0 : index
    %12 = vector.load %arg4[%c0_5, %c0_6] : memref<32x1xf32, #tpu.memory_space<vmem>>, vector<32x1xf32>
    %13 = vector.broadcast %12 : vector<32x1xf32> to vector<32x8xf32>
    %14 = arith.mulf %11, %13 : vector<32x8xf32>
    %cst_7 = arith.constant dense<0.000000e+00> : vector<8xf32>
    %15 = vector.multi_reduction <add>, %14, %cst_7 [0] : vector<32x8xf32> to vector<8xf32>
    %16 = vector.shape_cast %15 : vector<8xf32> to vector<1x8xf32>
    %c0_8 = arith.constant 0 : index
    %17 = memref.load %arg5[%c0_8] : memref<1xf32, #tpu.memory_space<smem>>
    %18 = vector.broadcast %17 : f32 to vector<1x8xf32>
    %19 = arith.addf %16, %18 : vector<1x8xf32>
    %c0_9 = arith.constant 0 : index
    %c0_10 = arith.constant 0 : index
    %20 = vector.load %arg6[%c0_9, %c0_10] : memref<1x8xf32, #tpu.memory_space<vmem>>, vector<1x8xf32>
    tpu.vector_store %arg6[%c0_9, %c0_10], %19 {strides = array<i32>} : memref<1x8xf32, #tpu.memory_space<vmem>>, vector<1x8xf32>,
    return
  }
  func.func @transform_0(%arg0: i32) -> (i32, i32) {
    %c0_i32 = arith.constant 0 : i32
    %c0_i32_0 = arith.constant 0 : i32
    return %arg0, %c0_i32 : i32, i32
  }
  func.func @transform_1(%arg0: i32) -> (i32, i32) {
    %c0_i32 = arith.constant 0 : i32
    %c0_i32_0 = arith.constant 0 : i32
    %c0_i32_1 = arith.constant 0 : i32
    return %c0_i32, %c0_i32_0 : i32, i32
  }
  func.func @transform_2(%arg0: i32) -> (i32, i32) {
    %c0_i32 = arith.constant 0 : i32
    %c0_i32_0 = arith.constant 0 : i32
    %c0_i32_1 = arith.constant 0 : i32
    return %c0_i32, %c0_i32_0 : i32, i32
  }
  func.func @transform_3(%arg0: i32) -> (i32, i32) {
    %c0_i32 = arith.constant 0 : i32
    %c0_i32_0 = arith.constant 0 : i32
    %c0_i32_1 = arith.constant 0 : i32
    return %c0_i32, %c0_i32_0 : i32, i32
  }
  func.func @transform_4(%arg0: i32) -> i32 {
    %c0_i32 = arith.constant 0 : i32
    %c0_i32_0 = arith.constant 0 : i32
    return %c0_i32 : i32
  }
  func.func @transform_5(%arg0: i32) -> (i32, i32) {
    %c0_i32 = arith.constant 0 : i32
    %c0_i32_0 = arith.constant 0 : i32
    return %c0_i32, %arg0 : i32, i32
  }
}

</mosaic_0001>

<bundles_post_ra>
// kernel: williams_nn_forward.1
= control target key start
LH: loop header
LB: loop body
LE: loop exit
PB: predicated region body
PF: predicated region fallthrough
CT: control target
= control target key end

     0   :  { %vm31_vm0 = vcmask 130048   ;;  %v406_v4 = vmov 0   ;;  %s588_s0 = inlined_call_operand.vmem [shape: f32[8,16], index: 0, kind: input, shape index: {}]   ;;  %s589_s1 = inlined_call_operand.vmem [shape: f32[32,16], index: 1, kind: input, shape index: {}]   ;;  %s590_s2 = inlined_call_operand.vmem [shape: f32[32,1], index: 2, kind: input, shape index: {}]   ;;  %s591_s3 = inlined_call_operand.vmem [shape: f32[32,1], index: 3, kind: input, shape index: {}]   ;;  %s592_s4 = inlined_call_operand.<no memory space> [shape: f32[1], index: 4, kind: input, shape index: {}]   ;;  %s593_s5 = inlined_call_operand.hbm [shape: f32[1,8], index: 5, kind: output, shape index: {}]  }
   0x1   :  { %v23_v0 = vld [vmem:[%s588_s0] sm:$0xff]  ;;  %v66_v2 = vld [vmem:[%s590_s2 + $0x10] sm:$0xff]  ;;  %369 = vset.pattern.permute.xlu0 %v406_v4  ;;  %370 = vset.pattern.permute.xlu1 %v406_v4  ;;  %v26_v9 = vld [vmem:[%s589_s1 + $0x8] sm:$0xff] }
   0x2   :  { %v64_v1 = vld [vmem:[%s590_s2] sm:$0xff]  ;;  %v24_v3 = vpack.c.bf16 %v23_v0, %v23_v0  ;;  %v70_v6 = vpack.c.bf16 %v66_v2, %v66_v2  ;;  %371 = vset.pattern.permute.xlu2 %v406_v4  ;;  %v27_v11 = vld [vmem:[%s589_s1 + $0x10] sm:$0xff]  ;;  %v28_v12 = vld [vmem:[%s589_s1 + $0x18] sm:$0xff] }
   0x3   :  { %v68_v5 = vpack.c.bf16 %v64_v1, %v64_v1  ;;  %v25_v8 = vld [vmem:[%s589_s1] sm:$0xff] }
   0x4   :  { %v39_v7 = vsel %vm31_vm0, %v24_v3, 0  ;;  %92 = vperm.xlu1 %370, %v70_v6   ;;  %v296_v10 = vld [vmem:[%s591_s3] sm:$0xff] }
   0x5   :  { %74 = vperm.xlu0 %369, %v68_v5   ;;  %48 = vmatpush.bf16.xpose.msra.mxu0 %v39_v7 }
   0x6   :  { %365 = vmatpush.bf16.xpose.msra.mxu1 %v39_v7 }
   0x7   :  { %11 = vsyncpa [#allocation4], 0  ;;  %v65_v13 = vld [vmem:[%s590_s2 + $0x8] sm:$0xff]  ;;  %v67_v14 = vld [vmem:[%s590_s2 + $0x18] sm:$0xff]  ;;  %302 = vperm.xlu2 %371, %v296_v10   ;;  %v29_v15 = vpack.c.bf16 %v26_v9, %v25_v8  ;;  %v30_v16 = vpack.c.bf16 %v28_v12, %v27_v11  ;;  %v407_v22 = vmov 839922192  }
   0x8   :  { %v69_v17 = vpack.c.bf16 %v65_v13, %v65_v13  ;;  %v71_v18 = vpack.c.bf16 %v67_v14, %v67_v14  ;;  %v297_v19 = vld [vmem:[%s591_s3 + $0x8] sm:$0xff]  ;;  %v298_v20 = vld [vmem:[%s591_s3 + $0x10] sm:$0xff]  ;;  %v299_v21 = vld [vmem:[%s591_s3 + $0x18] sm:$0xff]  ;;  %v78_v23 = vunpack.c.l.s4 %v407_v22  ;;  %s408_s17 = smov [#allocation3]   ;;  %s350_s21 = sshll.u32 %s593_s5, 4  ;;  %s351_s21 = int_to_ptr.hbm [resolvable:$true] %s350_s21 }
   0x9   :  { %s348_s18 = sshll.u32 %s408_s17, 4  ;;  %s349_s18 = int_to_ptr.vmem [resolvable:$true] %s348_s18 }
   0xa   :  { %v79_v24 = vunpack.c.0.s8 %v78_v23 }
   0xc   :  { %359 = vmatmul.msk.bf16.vlgmr.msra.gmra.mxu0 %vm31_vm0, %v29_v15  ;;  %101 = vperm.xlu1 %370, %v71_v18  }
   0xd   :  { %360 = vmatmul.msk.bf16.vlgmr.msra.gmra.mxu1 %vm31_vm0, %v30_v16  ;;  %83 = vperm.xlu0 %369, %v69_v17  }
   0xf   :  { %307 = vperm.xlu2 %371, %v297_v19  }
  0x14   :  { %317 = vperm.xlu1 %370, %v299_v21  }
  0x15   :  { %312 = vperm.xlu0 %369, %v298_v20  }
  0x76   :  { %v93_v26 = vpop.permute.xlu1 %92 }
  0x77   :  { %v75_v25 = vpop.permute.xlu0 %74  ;;  %v98_v28 = vperm.slane %v93_v26, %v79_v24 }
  0x78   :  { %v80_v27 = vperm.slane %v75_v25, %v79_v24 }
  0x79   :  { %v114_v32 = vunpack.c.l.bf16 %v98_v28 }
  0x7a   :  { %v112_v31 = vunpack.c.l.bf16 %v80_v27 }
  0x7e   :  { %v102_v38 = vpop.permute.xlu1 %101 }
  0x7f   :  { %v84_v37 = vpop.permute.xlu0 %83  ;;  %v107_v42 = vperm.slane %v102_v38, %v79_v24 }
  0x80   :  { %v89_v41 = vperm.slane %v84_v37, %v79_v24 }
  0x81   :  { %v115_v52 = vunpack.c.l.bf16 %v107_v42 }
  0x82   :  { %v113_v51 = vunpack.c.l.bf16 %v89_v41 }
  0x89   :  { %v50_v29 = vpop.f32.mrf.mxu0 }
  0x8a   :  { %v55_v30 = vpop.f32.mrf.mxu1  ;;  %v60_v33 = vpack.c.bf16 %v50_v29, %v50_v29 }
  0x8b   :  { %v62_v34 = vpack.c.bf16 %v55_v30, %v55_v30 }
  0x8c   :  { %v108_v35 = vunpack.c.l.bf16 %v60_v33 }
  0x8d   :  { %v110_v36 = vunpack.c.l.bf16 %v62_v34 }
  0x8e   :  { %v116_v39 = vadd.f32 %v112_v31, %v108_v35 }
  0x8f   :  { %v118_v40 = vadd.f32 %v114_v32, %v110_v36 }
  0x90   :  { %v120_v43 = vpack.c.bf16 %v116_v39, %v116_v39 }
  0x91   :  { %v122_v44 = vpack.c.bf16 %v118_v40, %v118_v40  ;;  %v52_v45 = vpop.f32.mrf.mxu0 }
  0x92   :  { %v57_v46 = vpop.f32.mrf.mxu1  ;;  %v481_v47 = vunpack.c.l.bf16 %v120_v43  ;;  %v61_v49 = vpack.c.bf16 %v52_v45, %v52_v45 }
  0x93   :  { %v483_v48 = vunpack.c.l.bf16 %v122_v44  ;;  %v63_v50 = vpack.c.bf16 %v57_v46, %v57_v46 }
  0x94   :  { %v128_v53 = vmul.f32 %v481_v47, %v481_v47  ;;  %v109_v55 = vunpack.c.l.bf16 %v61_v49 }
  0x95   :  { %v208_v54 = vmul.f32 %v483_v48, %v483_v48  ;;  %v111_v56 = vunpack.c.l.bf16 %v63_v50 }
  0x96   :  { %v489_v57 = vmin.f32 %v128_v53, 16.0  ;;  %v117_v59 = vadd.f32 %v113_v51, %v109_v55 }
  0x97   :  { %v491_v58 = vmin.f32 %v208_v54, 16.0  ;;  %v119_v60 = vadd.f32 %v115_v52, %v111_v56 }
  0x98   :  { %v121_v63 = vpack.c.bf16 %v117_v59, %v117_v59  ;;  %v130_v1 = vmul.f32 2.1237322e-06, %v489_v57  ;;  %v141_v2 = vmul.f32 3.8918573e-05, %v489_v57 }
  0x99   :  { %v210_v61 = vmul.f32 2.1237322e-06, %v491_v58  ;;  %v221_v62 = vmul.f32 3.8918573e-05, %v491_v58  ;;  %v123_v0 = vpack.c.bf16 %v119_v60, %v119_v60 }
  0x9a   :  { %v497_v4 = vunpack.c.l.bf16 %v121_v63  ;;  %v142_v7 = vadd.f32 0.001143296, %v141_v2  ;;  %v131_v11 = vadd.f32 0.00028619796, %v130_v1 }
  0x9b   :  { %v222_v3 = vadd.f32 0.001143296, %v221_v62  ;;  %v499_v5 = vunpack.c.l.bf16 %v123_v0  ;;  %v211_v6 = vadd.f32 0.00028619796, %v210_v61 }
  0x9c   :  { %v168_v9 = vmul.f32 %v497_v4, %v497_v4  ;;  %v143_v12 = vmul.f32 %v142_v7, %v489_v57  ;;  %v132_v19 = vmul.f32 %v131_v11, %v489_v57 }
  0x9d   :  { %v223_v8 = vmul.f32 %v222_v3, %v491_v58  ;;  %v248_v10 = vmul.f32 %v499_v5, %v499_v5  ;;  %v212_v16 = vmul.f32 %v211_v6, %v491_v58 }
  0x9e   :  { %v507_v14 = vmin.f32 %v168_v9, 16.0  ;;  %v144_v17 = vadd.f32 0.014752088, %v143_v12  ;;  %v133_v28 = vadd.f32 0.0036580483, %v132_v19 }
  0x9f   :  { %v224_v13 = vadd.f32 0.014752088, %v223_v8  ;;  %v509_v15 = vmin.f32 %v248_v10, 16.0  ;;  %v213_v25 = vadd.f32 0.0036580483, %v212_v16 }
  0xa0   :  { %v145_v22 = vmul.f32 %v144_v17, %v489_v57  ;;  %v181_v24 = vmul.f32 3.8918573e-05, %v507_v14  ;;  %v170_v33 = vmul.f32 2.1237322e-06, %v507_v14  ;;  %v134_v39 = vmul.f32 %v133_v28, %v489_v57 }
  0xa1   :  { %v225_v18 = vmul.f32 %v224_v13, %v491_v58  ;;  %v250_v20 = vmul.f32 2.1237322e-06, %v509_v15  ;;  %v261_v21 = vmul.f32 3.8918573e-05, %v509_v15  ;;  %v214_v36 = vmul.f32 %v213_v25, %v491_v58 }
  0xa2   :  { %v146_v29 = vadd.f32 0.112945676, %v145_v22  ;;  %v182_v35 = vadd.f32 0.001143296, %v181_v24  ;;  %v171_v44 = vadd.f32 0.00028619796, %v170_v33 }
  0xa3   :  { %v226_v23 = vadd.f32 0.112945676, %v225_v18  ;;  %v262_v26 = vadd.f32 0.001143296, %v261_v21  ;;  %v251_v30 = vadd.f32 0.00028619796, %v250_v20 }
  0xa4   :  { %v147_v34 = vmul.f32 %v146_v29, %v489_v57  ;;  %v183_v45 = vmul.f32 %v182_v35, %v507_v14  ;;  %v215_v46 = vadd.f32 0.05243302, %v214_v36  ;;  %v135_v51 = vadd.f32 0.05243302, %v134_v39 }
  0xa5   :  { %v227_v27 = vmul.f32 %v226_v23, %v491_v58  ;;  %v263_v31 = vmul.f32 %v262_v26, %v509_v15  ;;  %v252_v40 = vmul.f32 %v251_v30, %v509_v15  ;;  %v172_v54 = vmul.f32 %v171_v44, %v507_v14 }
  0xa6   :  { %v148_v42 = vadd.f32 0.4994258, %v147_v34  ;;  %v184_v56 = vadd.f32 0.014752088, %v183_v45  ;;  %v216_v59 = vmul.f32 %v215_v46, %v491_v58  ;;  %v136_v61 = vmul.f32 %v135_v51, %v489_v57 }
  0xa7   :  { %v228_v32 = vadd.f32 0.4994258, %v227_v27  ;;  %v264_v37 = vadd.f32 0.014752088, %v263_v31  ;;  %v253_v52 = vadd.f32 0.0036580483, %v252_v40 }
  0xa8   :  { %v149_v50 = vmul.f32 %v148_v42, %v489_v57  ;;  %v185_v63 = vmul.f32 %v184_v56, %v507_v14  ;;  %v173_v1 = vadd.f32 0.0036580483, %v172_v54  ;;  %v217_v3 = vadd.f32 0.18741608, %v216_v59 }
  0xa9   :  { %v229_v38 = vmul.f32 %v228_v32, %v491_v58  ;;  %v265_v41 = vmul.f32 %v264_v37, %v509_v15  ;;  %v254_v62 = vmul.f32 %v253_v52, %v509_v15  ;;  %v137_v8 = vadd.f32 0.18741608, %v136_v61 }
  0xaa   :  { %v150_v55 = vadd.f32 1.0, %v149_v50  ;;  %v186_v9 = vadd.f32 0.112945676, %v185_v63  ;;  %v174_v12 = vmul.f32 %v173_v1, %v507_v14  ;;  %v218_v18 = vmul.f32 %v217_v3, %v491_v58 }
  0xab   :  { %v527_v43 = vadd.f32 1.0, %v229_v38  ;;  %v266_v49 = vadd.f32 0.112945676, %v265_v41  ;;  %v255_v10 = vadd.f32 0.05243302, %v254_v62  ;;  %v138_v19 = vmul.f32 %v137_v8, %v489_v57 }
  0xac   :  { %v187_v17 = vmul.f32 %v186_v9, %v507_v14  ;;  %v175_v23 = vadd.f32 0.05243302, %v174_v12  ;;  %v219_v28 = vadd.f32 1.1283791, %v218_v18  ;;  %v160_v58 = vand.u32 2147483647, %v150_v55 }
  0xad   :  { %372 = vrcp.f32 %v527_v43  ;;  %v267_v53 = vmul.f32 %v266_v49, %v509_v15  ;;  %v256_v20 = vmul.f32 %v255_v10, %v509_v15  ;;  %v139_v29 = vadd.f32 1.1283791, %v138_v19 }
  0xae   :  { %374 = vrcp.f32 %v150_v55  ;;  %v188_v22 = vadd.f32 0.4994258, %v187_v17  ;;  %v176_v57 = vmul.f32 %v175_v23, %v507_v14  ;;  %v162_v33 = vand.u32 2147483648, %v150_v55 }
  0xaf   :  { %v268_v60 = vadd.f32 0.4994258, %v267_v53  ;;  %v257_v30 = vadd.f32 0.18741608, %v256_v20  ;;  %vm156_vm3 = vweird.f32 %v150_v55  ;;  %vm236_vm4 = vweird.f32 %v527_v43 }
  0xb0   :  { %v189_v26 = vmul.f32 %v188_v22, %v507_v14  ;;  %v240_v37 = vand.u32 2147483647, %v527_v43  ;;  %v242_v38 = vand.u32 2147483648, %v527_v43  ;;  %v177_v45 = vadd.f32 0.18741608, %v176_v57  ;;  %v318_v57 = vpop.permute.xlu1 %317 }
  0xb1   :  { %v269_v2 = vmul.f32 %v268_v60, %v509_v15  ;;  %v258_v40 = vmul.f32 %v257_v30, %v509_v15  ;;  %vm161_vm8 = vcmp.eq.f32.partialorder %v160_v58, 8.507059e+37  ;;  %v220_v62 = vmul.f32 %v219_v28, %v483_v48  ;;  %v313_v30 = vpop.permute.xlu0 %312 }
  0xb2   :  { %v190_v34 = vadd.f32 1.0, %v189_v26  ;;  %v243_v51 = vor.u32 1.1754944e-38, %v242_v38  ;;  %vm241_vm11 = vcmp.eq.f32.partialorder %v240_v37, 8.507059e+37  ;;  %v178_v60 = vmul.f32 %v177_v45, %v507_v14 }
  0xb3   :  { %v538_v0 = vpop.eup %372  ;;  %v543_v7 = vadd.f32 1.0, %v269_v2  ;;  %v259_v53 = vadd.f32 1.1283791, %v258_v40 }
  0xb4   :  { %v232_v6 = vmul.f32 %v538_v0, %v527_v43  ;;  %v375_v11 = vpop.eup %374  ;;  %vm237_vm2 = vweird.f32 %v538_v0  ;;  %v163_v43 = vor.u32 1.1754944e-38, %v162_v33  ;;  %v200_v8 = vand.u32 2147483647, %v190_v34 }
  0xb5   :  { %376 = vrcp.f32 %v543_v7  ;;  %v152_v16 = vmul.f32 %v375_v11, %v150_v55  ;;  %vm157_vm1 = vweird.f32 %v375_v11  ;;  %vm567_vm7 = vmor %vm236_vm4, %vm237_vm2  ;;  %v282_v46 = vand.u32 2147483648, %v543_v7 }
  0xb6   :  { %v233_v13 = vsub.f32 1.0, %v232_v6  ;;  %vm560_vm5 = vmor %vm156_vm3, %vm157_vm1  ;;  %378 = vrcp.f32 %v190_v34  ;;  %vm276_vm9 = vweird.f32 %v543_v7  ;;  %v280_v15 = vand.u32 2147483647, %v543_v7 }
  0xb7   :  { %v153_v21 = vsub.f32 1.0, %v152_v16  ;;  %v140_v55 = vmul.f32 %v139_v29, %v481_v47  ;;  %v283_v61 = vor.u32 1.1754944e-38, %v282_v46  ;;  %v260_v3 = vmul.f32 %v259_v53, %v499_v5 }
  0xb8   :  { %v234_v24 = vmul.f32 %v538_v0, %v233_v13  ;;  %vm281_vm12 = vcmp.eq.f32.partialorder %v280_v15, 8.507059e+37  ;;  %v202_v9 = vand.u32 2147483648, %v190_v34  ;;  %vm196_vm14 = vweird.f32 %v190_v34  ;;  %v303_v13 = vpop.permute.xlu2 %302 }
  0xb9   :  { %v154_v25 = vmul.f32 %v375_v11, %v153_v21  ;;  %vm201_vm0 = vcmp.eq.f32.partialorder %v200_v8, 8.507059e+37  ;;  %vm324_vm1 = vcmask 64512   ;;  %v339_v46 = vstv %s592_s4 }
  0xba   :  { %v235_v35 = vadd.f32 %v538_v0, %v234_v24  ;;  %v203_v16 = vor.u32 1.1754944e-38, %v202_v9  ;;  %vm341_vm2 = vcmask 57344  }
  0xbb   :  { %v377_v27 = vpop.eup %376  ;;  %v155_v32 = vadd.f32 %v375_v11, %v154_v25 }
  0xbc   :  { %v272_v31 = vmul.f32 %v377_v27, %v543_v7  ;;  %vm277_vm6 = vweird.f32 %v377_v27  ;;  %v239_v49 = vsel %vm567_vm7, %v538_v0, %v235_v35  ;;  %v379_v56 = vpop.eup %378  ;;  %v179_v7 = vadd.f32 1.1283791, %v178_v60 }
  0xbd   :  { %v159_v42 = vsel %vm560_vm5, %v375_v11, %v155_v32  ;;  %vm278_vm10 = vmor %vm276_vm9, %vm277_vm6  ;;  %v244_v59 = vsel %vm241_vm11, %v243_v51, %v239_v49  ;;  %v192_v0 = vmul.f32 %v379_v56, %v190_v34  ;;  %vm197_vm13 = vweird.f32 %v379_v56 }
  0xbe   :  { %v273_v36 = vsub.f32 1.0, %v272_v31  ;;  %v164_v52 = vsel %vm161_vm8, %v163_v43, %v159_v42  ;;  %v245_v2 = vmul.f32 %v244_v59, %v220_v62  ;;  %v180_v48 = vmul.f32 %v179_v7, %v497_v4  ;;  %vm198_vm15 = vmor %vm196_vm14, %vm197_vm13 }
  0xbf   :  { %v165_v63 = vmul.f32 %v164_v52, %v140_v55  ;;  %v193_v6 = vsub.f32 1.0, %v192_v0 }
  0xc0   :  { %v274_v41 = vmul.f32 %v377_v27, %v273_v36  ;;  %v363_v12 = vclamps-f32 %v245_v2, 1.0  ;;  %v308_v4 = vpop.permute.xlu2 %307 }
  0xc1   :  { %v361_v47 = vclamps-f32 %v165_v63, 1.0  ;;  %v194_v11 = vmul.f32 %v379_v56, %v193_v6 }
  0xc2   :  { %v275_v50 = vadd.f32 %v377_v27, %v274_v41  ;;  %v290_v20 = vpack.c.bf16 %v363_v12, %v363_v12 }
  0xc3   :  { %v195_v14 = vadd.f32 %v379_v56, %v194_v11  ;;  %v288_v18 = vpack.c.bf16 %v361_v47, %v361_v47 }
  0xc4   :  { %v279_v54 = vsel %vm278_vm10, %v377_v27, %v275_v50  ;;  %v294_v25 = vunpack.c.l.bf16 %v290_v20 }
  0xc5   :  { %v284_v1 = vsel %vm281_vm12, %v283_v61, %v279_v54  ;;  %v199_v19 = vsel %vm198_vm15, %v379_v56, %v195_v14  ;;  %v292_v23 = vunpack.c.l.bf16 %v288_v18 }
  0xc6   :  { %v285_v10 = vmul.f32 %v284_v1, %v260_v3  ;;  %v204_v5 = vsel %vm201_vm0, %v203_v16, %v199_v19  ;;  %v322_v32 = vmul.f32 %v313_v30, %v294_v25 }
  0xc7   :  { %v205_v21 = vmul.f32 %v204_v5, %v180_v48  ;;  %v320_v28 = vmul.f32 %v303_v13, %v292_v23 }
  0xc8   :  { %v364_v17 = vclamps-f32 %v285_v10, 1.0  ;;  %v328_v36 = vsel %vm324_vm1, %v322_v32, 0.0 }
  0xc9   :  { %v362_v24 = vclamps-f32 %v205_v21, 1.0  ;;  %v325_v58 = vsel %vm324_vm1, %v320_v28, 0.0 }
  0xca   :  { %v291_v22 = vpack.c.bf16 %v364_v17, %v364_v17 }
  0xcb   :  { %v289_v26 = vpack.c.bf16 %v362_v24, %v362_v24 }
  0xcc   :  { %v295_v27 = vunpack.c.l.bf16 %v291_v22 }
  0xcd   :  { %v293_v29 = vunpack.c.l.bf16 %v289_v26 }
  0xce   :  { %v323_v33 = vmul.f32 %v318_v57, %v295_v27 }
  0xcf   :  { %v321_v31 = vmul.f32 %v308_v4, %v293_v29 }
  0xd0   :  { %v330_v38 = vsel %vm324_vm1, %v323_v33, 0.0 }
  0xd1   :  { %v326_v34 = vsel %vm324_vm1, %v321_v31, 0.0 }
  0xd2   :  { %v327_v35 = vadd.f32 %v326_v34, %v325_v58 }
  0xd4   :  { %v329_v37 = vadd.f32 %v328_v36, %v327_v35 }
  0xd6   :  { %v331_v39 = vadd.f32 %v330_v38, %v329_v37 }
  0xd8   :  { %v332_v40 = vrot.slane %v331_v39, 4 }
  0xda   :  { %v333_v41 = vadd.f32 %v332_v40, %v331_v39 }
  0xdc   :  { %v334_v42 = vrot.slane %v333_v41, 2 }
  0xde   :  { %v335_v44 = vadd.f32 %v334_v42, %v333_v41 }
  0xe0   :  { %v336_v45 = vrot.slane %v335_v44, 1 }
  0xe2   :  { %v337_v43 = vadd.f32 %v336_v45, %v335_v44 }
  0xe4   :  { %v340_v49 = vadd.f32 %v339_v46, %v337_v43 }
  0xe6   :  { %342 = vst.msk [vmem:[#allocation3] sm:$0x1] %vm341_vm2, %v340_v49 }
  0xe7   :  { %353 = dma.vmem_to_hbm [thread:$0]  %s349_s18, 16, %s351_s21, [#allocation4]  }
  0xe8   :  { %404 = dma.done.wait [#allocation4], 16  }
  0xe9   :  { %405 = vsyncadd [#allocation4], 4294967280 }
  0xea   :  { %358 = vsyncpa [#allocation4], 1 }

</bundles_post_ra>
